<compile_context>
chip_gen: v5e
topology: v5e:2x2
jax: 0.10.0
libtpu: 0.0.40
codegen_flags: <defaults>
</compile_context>

<pallas_src>
import functools

import jax
import jax.numpy as jnp
from jax import lax
from jax.experimental import pallas as pl
from jax.experimental.pallas import tpu as pltpu


def _layernorm_kernel(params_ref, x_ref, o_ref, *, hidden):
    """Row-wise LayerNorm over the last (lane) dimension.

    params_ref: SMEM (2,) f32 = [alpha / eps, beta]  (eps folded in host-side)
    x_ref/o_ref: (row_tile, hidden) VMEM blocks.
    """
    x = x_ref[...].astype(jnp.float32)

    # Fused single pass over the tile: sum(x) and sum(x*x).
    s1 = jnp.sum(x, axis=-1, keepdims=True)
    s2 = jnp.sum(x * x, axis=-1, keepdims=True)
    mean = s1 * (1.0 / hidden)
    # torch.std default is unbiased: divide by (N - 1).
    var = jnp.maximum(s2 - s1 * mean, 0.0) / jnp.float32(hidden - 1)

    # out = alpha * (x - mean) / (std * eps) + beta
    #     = (alpha / eps) * rsqrt(var) * (x - mean) + beta
    inv_std = lax.rsqrt(var)              # one EUP rsqrt per row, no full-tile divide
    scale = params_ref[0] * inv_std       # per-row scalar (alpha/eps already folded)
    out = (x - mean) * scale + params_ref[1]
    o_ref[...] = out.astype(o_ref.dtype)


def _round_up(a, m):
    return ((a + m - 1) // m) * m


def _pick_row_tile(rows, hidden, itemsize):
    # Sublane multiple depends on dtype packing: f32 -> 8, bf16 -> 16, int8/fp8 -> 32.
    sublane = max(8, 32 // max(itemsize, 1))

    # Keep the double-buffered footprint (2 input + 2 output blocks) around
    # ~8 MiB so it fits comfortably in scoped VMEM on every generation
    # (v5e default 16 MiB, v6e/v7x 32 MiB scoped / 64 MiB physical on v7x).
    budget_bytes = 8 * 1024 * 1024
    row_tile = max(sublane, budget_bytes // (4 * hidden * max(itemsize, 1)))
    row_tile = max(sublane, (row_tile // sublane) * sublane)

    padded_rows_min = _round_up(rows, sublane)
    row_tile = min(row_tile, padded_rows_min)

    # Ensure >= 2 grid steps when possible so v7x's two TensorCores both get work.
    if padded_rows_min >= 2 * sublane:
        half = max(sublane, (padded_rows_min // 2 // sublane) * sublane)
        row_tile = min(row_tile, half)

    return row_tile


def layer_normalization(x, alpha, beta, eps=1e-6):
    """x: (..., hidden). alpha, beta: shape (1,) scalar parameters."""
    orig_shape = x.shape
    hidden = orig_shape[-1]
    x2d = x.reshape(-1, hidden)
    rows = x2d.shape[0]
    itemsize = jnp.dtype(x.dtype).itemsize

    row_tile = _pick_row_tile(rows, hidden, itemsize)
    padded_rows = _round_up(rows, row_tile)
    if padded_rows != rows:
        # Masked tail via zero-padding; padded rows are discarded after the call.
        x2d = jnp.pad(x2d, ((0, padded_rows - rows), (0, 0)))

    # Fold 1/eps into alpha so the kernel does a single per-row multiply.
    params = jnp.concatenate(
        [alpha.astype(jnp.float32) / jnp.float32(eps), beta.astype(jnp.float32)]
    )  # (2,)

    out2d = pl.pallas_call(
        functools.partial(_layernorm_kernel, hidden=hidden),
        out_shape=jax.ShapeDtypeStruct((padded_rows, hidden), x.dtype),
        grid=(padded_rows // row_tile,),
        in_specs=[
            pl.BlockSpec(memory_space=pltpu.SMEM),               # params (2,)
            pl.BlockSpec((row_tile, hidden), lambda i: (i, 0)),  # x rows
        ],
        out_specs=pl.BlockSpec((row_tile, hidden), lambda i: (i, 0)),
        compiler_params=pltpu.CompilerParams(
            dimension_semantics=("parallel",),
            vmem_limit_bytes=32 * 1024 * 1024,
        ),
    )(params, x2d)

    if padded_rows != rows:
        out2d = out2d[:rows]
    return out2d.reshape(orig_shape)


if __name__ == "__main__":
    key = jax.random.PRNGKey(0)
    batch, seq, hidden = 2, 8, 128
    x = jax.random.normal(key, (batch, seq, hidden), dtype=jnp.float32)

    # Deterministic parameter init (matches nn.Parameter(torch.ones(1)/zeros(1)))
    alpha = jnp.ones((1,), dtype=jnp.float32)
    beta = jnp.zeros((1,), dtype=jnp.float32)
    eps = 1e-6

    out = layer_normalization(x, alpha, beta, eps)
    out = jax.block_until_ready(out)

    # Pure-JAX reference with the exact PyTorch-module semantics.
    mean = jnp.mean(x, axis=-1, keepdims=True)
    var = jnp.sum((x - mean) ** 2, axis=-1, keepdims=True) / (hidden - 1)
    std = jnp.sqrt(var)
    ref = alpha[0] * (x - mean) / (std * eps) + beta[0]

    assert out.shape == x.shape and out.dtype == x.dtype
    ref_scale = float(jnp.max(jnp.abs(ref)))
    assert jnp.allclose(out, ref, rtol=1e-4, atol=1e-4 * ref_scale), (
        "mismatch vs reference"
    )
    print("KERNEL_OK")
</pallas_src>

<mosaic_0001>
module attributes {stable_mosaic.version = 11 : i64} {
  func.func @_layernorm_kernel(%arg0: i32, %arg1: memref<2xf32, #tpu.memory_space<smem>>, %arg2: memref<8x128xf32, #tpu.memory_space<vmem>>, %arg3: memref<8x128xf32, #tpu.memory_space<vmem>>) attributes {dimension_semantics = [#tpu.dimension_semantics<parallel>], iteration_bounds = array<i64: 2>, scalar_prefetch = 0 : i64, scratch_operands = 0 : i64, tpu.core_type = #tpu.core_type<tc>, window_params = [{transform_indices = @transform_0, window_bounds = array<i64: 2>}, {transform_indices = @transform_1, window_bounds = array<i64: 8, 128>}, {transform_indices = @transform_2, window_bounds = array<i64: 8, 128>}]} {
    %c0 = arith.constant 0 : index
    %c0_0 = arith.constant 0 : index
    %0 = vector.load %arg2[%c0, %c0_0] : memref<8x128xf32, #tpu.memory_space<vmem>>, vector<8x128xf32>
    %cst = arith.constant dense<0.000000e+00> : vector<8xf32>
    %1 = vector.multi_reduction <add>, %0, %cst [1] : vector<8x128xf32> to vector<8xf32>
    %2 = vector.shape_cast %1 : vector<8xf32> to vector<8x1xf32>
    %3 = arith.mulf %0, %0 : vector<8x128xf32>
    %cst_1 = arith.constant dense<0.000000e+00> : vector<8xf32>
    %4 = vector.multi_reduction <add>, %3, %cst_1 [1] : vector<8x128xf32> to vector<8xf32>
    %5 = vector.shape_cast %4 : vector<8xf32> to vector<8x1xf32>
    %cst_2 = arith.constant 7.812500e-03 : f32
    %6 = vector.broadcast %cst_2 : f32 to vector<8x1xf32>
    %7 = arith.mulf %2, %6 : vector<8x1xf32>
    %8 = arith.mulf %2, %7 : vector<8x1xf32>
    %9 = arith.subf %5, %8 : vector<8x1xf32>
    %cst_3 = arith.constant 0.000000e+00 : f32
    %10 = vector.broadcast %cst_3 : f32 to vector<8x1xf32>
    %11 = arith.maximumf %9, %10 : vector<8x1xf32>
    %cst_4 = arith.constant 1.270000e+02 : f32
    %12 = vector.broadcast %cst_4 : f32 to vector<8x1xf32>
    %13 = arith.divf %11, %12 : vector<8x1xf32>
    %14 = math.rsqrt %13 : vector<8x1xf32>
    %c0_5 = arith.constant 0 : index
    %15 = memref.load %arg1[%c0_5] : memref<2xf32, #tpu.memory_space<smem>>
    %16 = vector.broadcast %15 : f32 to vector<8x1xf32>
    %17 = arith.mulf %16, %14 : vector<8x1xf32>
    %18 = vector.broadcast %7 : vector<8x1xf32> to vector<8x128xf32>
    %19 = arith.subf %0, %18 : vector<8x128xf32>
    %20 = vector.broadcast %17 : vector<8x1xf32> to vector<8x128xf32>
    %21 = arith.mulf %19, %20 : vector<8x128xf32>
    %c1 = arith.constant 1 : index
    %22 = memref.load %arg1[%c1] : memref<2xf32, #tpu.memory_space<smem>>
    %23 = vector.broadcast %22 : f32 to vector<8x128xf32>
    %24 = arith.addf %21, %23 : vector<8x128xf32>
    %c0_6 = arith.constant 0 : index
    %c0_7 = arith.constant 0 : index
    %25 = vector.load %arg3[%c0_6, %c0_7] : memref<8x128xf32, #tpu.memory_space<vmem>>, vector<8x128xf32>
    tpu.vector_store %arg3[%c0_6, %c0_7], %24 {strides = array<i32>} : memref<8x128xf32, #tpu.memory_space<vmem>>, vector<8x128xf32>,
    return
  }
  func.func @transform_0(%arg0: i32) -> i32 {
    %c0_i32 = arith.constant 0 : i32
    %c0_i32_0 = arith.constant 0 : i32
    return %c0_i32 : i32
  }
  func.func @transform_1(%arg0: i32) -> (i32, i32) {
    %c0_i32 = arith.constant 0 : i32
    %c0_i32_0 = arith.constant 0 : i32
    return %arg0, %c0_i32 : i32, i32
  }
  func.func @transform_2(%arg0: i32) -> (i32, i32) {
    %c0_i32 = arith.constant 0 : i32
    %c0_i32_0 = arith.constant 0 : i32
    return %arg0, %c0_i32 : i32, i32
  }
}

</mosaic_0001>

<bundles_post_ra>
// kernel: tpu_custom_call.1
= control target key start
LH: loop header
LB: loop body
LE: loop exit
PB: predicated region body
PF: predicated region fallthrough
CT: control target
= control target key end

     0   :  { %7 = vsyncpa [#allocation5], 0  ;;  %s663_s0 = inlined_call_operand.hbm [shape: f32[2], index: 0, kind: input, shape index: {}]   ;;  %s664_s1 = inlined_call_operand.hbm [shape: f32[16,128], index: 1, kind: input, shape index: {}]   ;;  %s665_s2 = inlined_call_operand.hbm [shape: f32[16,128], index: 2, kind: output, shape index: {}]  }
   0x1   :  { %8 = vsyncpa [#allocation3], 0 }
   0x2   :  { %10 = vsyncpa [#allocation3 + $0x1], 0 }
   0x3   :  { %11 = vsyncpa [#allocation4], 0 }
   0x4   :  { %13 = vsyncpa [#allocation4 + $0x1], 0  ;;  %s521_s9 = smov 0   ;;  %s523_s10 = smov 0  }
   0x5   :  { %s525_s11 = smov 0   ;;  %s527_s12 = smov 0  }
   0x6 LB: > { %s542_s13 = sadd.s32 4294967295, %s502_s12   ;;  %s310_s14 = sadd.s32 4294967294, %s502_s12   ;;  %s502_s12 = sphi %s527_s12, %s675_s12   ;;  %s498_s11 = sphi %s525_s11, %s674_s11   ;;  %s494_s10 = sphi %s523_s10, %s673_s10   ;;  %s490_s9 = sphi %s521_s9, %s672_s9  }
   0x7   : > { %p60_p0 = scmp.ne.s32.totalorder %s494_s10, %s490_s9  ;;  %p61_p1 = scmp.eq.s32.totalorder %s542_s13, 0 }
   0x8   : > { %p84_p2 = scmp.eq.s32.totalorder %s542_s13, 1  ;;  %p90_p3 = scmp.eq.s32.totalorder %s310_s14, 1 }
   0x9   : > { %p551_p4 = por %p61_p1, %p60_p0  ;;  %p311_p5 = scmp.ge.s32.totalorder %s502_s12, 1 }
   0xa   : > { %p556_p6 = por %p90_p3, %p60_p0  ;;  %p97_p7 = scmp.lt.s32.totalorder %s502_s12, 3 }
   0xb   : > { %s109_s19 = sshll.u32 %s663_s0, 4  ;;  %s572_s21 = sadd.s32 1, %s502_s12   ;;  %s110_s19 = int_to_ptr.hbm [resolvable:$true] %s109_s19 }
   0xc   : > { %p564_p8 = pnand %p311_p5, %p97_p7  ;;  %s44_s22 = ssub.s32 %s502_s12, %s572_s21 }
   0xd   : > { %p45_p12 = scmp.eq.s32.totalorder %s44_s22, 0  ;;  %s47_s23 = sadd.s32 1, %s498_s11 }
   0xe   : > { %p333_p10 = pneg %p564_p8  ;;  %p54_p13 = scmp.ne.s32.totalorder %s498_s11, %s494_s10 }
   0xf   : > { %s504_s24 = smov [#allocation2]   ;;  %p55_p0 = scmp.eq.s32.totalorder %s502_s12, 0 }
  0x10   : > { %p334_p11 = pnand %p333_p10, %p61_p1  ;;  %p587_p3 = por %p84_p2, %p54_p13 }
  0x11   : > { %s582_s25 = scalar_select %p45_p12, %s498_s11, %s47_s23  }
  0x12   : > { %336 = dma.hbm_to_smem (!%p334_p11), %s110_s19, 16, %s504_s24, [#allocation5]  }
  0x13   : > { %s120_s27 = sand.u32 1, %s498_s11   ;;  %p56_p5 = por %p55_p0, %p54_p13 }
  0x14   : > { %p346_p7 = scmp.lt.s32.totalorder %s502_s12, 2  ;;  %s314_s28 = sshll.u32 %s120_s27, 3 }
  0x15   : > { %s315_s29 = sshll.u32 %s502_s12, 3  ;;  %s124_s6 = scalar_lea.vmem [#allocation6], %s314_s28 }
  0x16   : > { %s128_s4 = scalar_lea.hbm %s664_s1, %s315_s29  ;;  %s132_s7 = sshll.u32 %s124_s6, 4  ;;  %s133_s7 = int_to_ptr.vmem [resolvable:$true] %s132_s7 }
  0x17   : > { %s130_s5 = sshll.u32 %s128_s4, 4  ;;  %p597_p10 = pnand %p346_p7, %p56_p5  ;;  %s131_s5 = int_to_ptr.hbm [resolvable:$true] %s130_s5 }
  0x18   : > { %s121_s14 = scalar_lea.sflag [#allocation3], %s120_s27  ;;  %s402_s17 = sshra.s32 %s131_s5, 4  ;;  %s403_s17 = int_to_ptr.hbm [resolvable:$true] %s402_s17 }
  0x19   : > { %s404_s18 = scalar_lea.hbm %s403_s17, 8  ;;  %p406_p11 = pneg %p597_p10 }
  0x1a   : > { %p405_p2 = scmp.ne.s32.totalorder %s403_s17, %s404_s18  ;;  %s409_s23 = scalar_lea.hbm %s664_s1, 16 }
  0x1b   : > { %p410_p0 = scmp.lt.s32.totalorder %s403_s17, %s664_s1  ;;  %p411_p5 = scmp.lt.s32.totalorder %s409_s23, %s404_s18 }
  0x1c   : > { %p407_p12 = pnand %p406_p11, %p405_p2 }
  0x1d   : > { %p412_p7 = por %p411_p5, %p410_p0 }
  0x1e   : > { %p408_p13 = pneg %p407_p12 }
  0x20   : > { %p413_p9 = pnand %p412_p7, %p408_p13 }
  0x22   : > { %416 = shalt.err (!%p413_p9)
}
  0x23   : > { %340 = dma.hbm_to_vmem [thread:$0]  (!%p597_p10), %s131_s5, 128, %s133_s7, %s121_s14  }
  0x24   : > { %141 = sbr.rel (%p564_p8) target bundleno = 206 (0xce), region = 28 }
  0x29   : > { %477 = dma.done.wait (%p61_p1), [#allocation5], 16  }
  0x2a   : > { %479 = vsyncadd (%p61_p1), [#allocation5], 4294967280  ;;  %s618_s27 = sand.u32 1, %s494_s10  }
  0x2b   : > { %s318_s29 = sshll.u32 %s618_s27, 3  ;;  %s149_s30 = scalar_lea.sflag [#allocation3], %s618_s27 }
  0x2c   : > { %s152_s3 = scalar_lea.vmem [#allocation6], %s318_s29 }
  0x2d   : > { %481 = dma.done.wait (%p551_p4), %s149_s30, 128  }
  0x2e   : > { %483 = vsyncadd (%p551_p4), %s149_s30, 4294967168 }
  0x2f   : > { %158 = sfence }
  0x30   : > { %v175_v0 = vld [vmem:[%s152_s3] sm:$0xff]  ;;  %v505_v2 = vmov 127.0   ;;  %s203_s15 = sld [smem:[#allocation2]]  ;;  %s322_s4 = sshll.u32 %s542_s13, 3 }
  0x31   : > { %176 = vadd.xlane.f32.xlu0 %v175_v0  ;;  %v178_v1 = vmul.f32 %v175_v0, %v175_v0  ;;  %383 = vrcp.f32 %v505_v2  ;;  %s320_s20 = sld [smem:[#allocation2 + $0x1]]  ;;  %s223_s7 = scalar_lea.hbm %s665_s2, %s322_s4 }
  0x32   : > { %s174_s8 = scalar_lea.vmem [#allocation7], %s318_s29  ;;  %s227_s17 = sshll.u32 %s223_s7, 4  ;;  %s228_s17 = int_to_ptr.hbm [resolvable:$true] %s227_s17 }
  0x33   : > { %s225_s14 = sshll.u32 %s174_s8, 4  ;;  %s213_s13 = scalar_lea.sflag [#allocation4], %s618_s27  ;;  %s226_s14 = int_to_ptr.vmem [resolvable:$true] %s225_s14 }
  0x34   : > { %s446_s18 = sshra.s32 %s228_s17, 4  ;;  %s452_s24 = scalar_lea.hbm %s665_s2, 16  ;;  %s447_s18 = int_to_ptr.hbm [resolvable:$true] %s446_s18 }
  0x35   : > { %s448_s19 = scalar_lea.hbm %s447_s18, 8  ;;  %p453_p9 = scmp.lt.s32.totalorder %s447_s18, %s665_s2 }
  0x36   : > { %v204_v22 = vstv %s203_s15  ;;  %p449_p1 = scmp.ne.s32.totalorder %s447_s18, %s448_s19  ;;  %p454_p10 = scmp.lt.s32.totalorder %s452_s24, %s448_s19 }
  0x37   : > { %v384_v3 = vpop.eup %383  ;;  %v209_v26 = vstv %s320_s20 }
  0x38   : > { %v186_v4 = vmul.f32 127.0, %v384_v3  ;;  %vm190_vm0 = vweird.f32 %v384_v3  ;;  %p450_p4 = pnand %p449_p1, %p587_p3  ;;  %p455_p2 = por %p454_p10, %p453_p9 }
  0x39   : > { %179 = vadd.xlane.f32.xlu0 %v178_v1 }
  0x3a   : > { %v187_v5 = vsub.f32 1.0, %v186_v4  ;;  %p451_p8 = pneg %p450_p4 }
  0x3c   : > { %v188_v7 = vmul.f32 %v384_v3, %v187_v5  ;;  %p456_p11 = pnand %p455_p2, %p451_p8 }
  0x3e   : > { %v189_v9 = vadd.f32 %v384_v3, %v188_v7 }
  0x40   : > { %v191_v13 = vsel %vm190_vm0, %v384_v3, %v189_v9 }
  0xa4   : > { %v177_v6 = vpop.xlane.xlu0 %176 }
  0xa5   : > { %v181_v8 = vmul.f32 0.0078125, %v177_v6 }
  0xa7   : > { %v182_v10 = vmul.f32 %v181_v8, %v177_v6  ;;  %v206_v24 = vsub.f32 %v175_v0, %v181_v8 }
  0xac   : > { %v180_v11 = vpop.xlane.xlu0 %179 }
  0xad   : > { %v183_v12 = vsub.f32 %v180_v11, %v182_v10 }
  0xaf   : > { %v184_v14 = vmax.f32 %v183_v12, 0.0 }
  0xb1   : > { %v192_v15 = vmul.f32 %v191_v13, %v184_v14 }
  0xb3   : > { %385 = vrsqrt.f32 %v192_v15  ;;  %vm199_vm2 = vweird.f32 %v192_v15 }
  0xb9   : > { %v386_v16 = vpop.eup %385 }
  0xba   : > { %v194_v17 = vmul.f32 %v386_v16, %v192_v15  ;;  %vm200_vm1 = vweird.f32 %v386_v16 }
  0xbb   : > { %vm201_vm3 = vmor %vm199_vm2, %vm200_vm1 }
  0xbc   : > { %v195_v18 = vmul.f32 %v386_v16, %v194_v17 }
  0xbe   : > { %v196_v19 = vmul.f32 0.5, %v195_v18 }
  0xc0   : > { %v197_v20 = vsub.f32 1.5, %v196_v19 }
  0xc2   : > { %v198_v21 = vmul.f32 %v386_v16, %v197_v20 }
  0xc4   : > { %v202_v23 = vsel %vm201_vm3, %v386_v16, %v198_v21 }
  0xc5   : > { %v205_v25 = vmul.f32 %v204_v22, %v202_v23 }
  0xc7   : > { %v207_v27 = vmul.f32 %v206_v24, %v205_v25 }
  0xc9   : > { %v210_v28 = vadd.f32 %v209_v26, %v207_v27 }
  0xcb   : > { %211 = vst [vmem:[%s174_s8] sm:$0xff] %v210_v28 }
  0xcc   : > { %459 = shalt.err (!%p456_p11)
}
  0xcd   : > { %331 = dma.vmem_to_hbm [thread:$0]  (%p587_p3), %s226_s14, 128, %s228_s17, %s213_s13  }
  0xce PF: > { %s239_s27 = sand.u32 1, %s490_s9   ;;  %p671_p12 = scmp.ge.s32.totalorder %s502_s12, 2 }
  0xcf   : > { %s240_s30 = scalar_lea.sflag [#allocation4], %s239_s27 }
  0xd0   : > { %p342_p13 = pnand %p671_p12, %p556_p6 }
  0xd2   : > { %p343_p0 = pneg %p342_p13 }
  0xd4   : > { %485 = dma.done.wait (%p343_p0), %s240_s30, 128  }
  0xd5   : > { %487 = vsyncadd (%p343_p0), %s240_s30, 4294967168  ;;  %p16_p5 = scmp.ge.s32.totalorder %s572_s21, 4   ;;  %s672_s9 = smov %s494_s10 }
  0xd6   : > { %s673_s10 = smov %s498_s11  ;;  %s674_s11 = smov %s582_s25 }
  0xd7   : > { %s675_s12 = smov %s572_s21  ;;  %18 = sbr.rel (!%p16_p5) target bundleno = 6 (0x6), region = 78 }
  0xdc   :  { %246 = vsyncpa [#allocation3], 1 }
  0xdd   :  { %248 = vsyncpa [#allocation3 + $0x1], 1 }
  0xde   :  { %249 = vsyncpa [#allocation4], 1 }
  0xdf   :  { %251 = vsyncpa [#allocation4 + $0x1], 1 }
  0xe0   :  { %252 = vsyncpa [#allocation5], 1 }
  0xe1   :  { %254 = vsyncpa [#allocation5 + $0x1], 1 }

</bundles_post_ra>
